<compile_context>
chip_gen: v6e
topology: v6e:2x2x1
jax: 0.10.0
libtpu: 0.0.40
codegen_flags: <defaults>
</compile_context>

<pallas_src>
import functools

import jax
import jax.numpy as jnp
from jax import lax
from jax.experimental import pallas as pl
from jax.experimental.pallas import tpu as pltpu

_IDX_SENTINEL = 2 ** 31 - 16     # running-best init index, > any real ref index
_IDX_BIG = 2 ** 31 - 1           # "masked" index value inside argmin rounds
_PAD_COORD = 3e14                # coordinate injected into padded ref columns
_MXU_DIM_THRESHOLD = 32          # feature dims >= this use the MXU expansion path


def _round_up(x, m):
    return ((x + m - 1) // m) * m


def _knn_kernel(ref_ref, q_ref, d_ref, i_ref, db_ref, ib_ref, *,
                k, tile_n, n_valid_last, mask_needed, use_mxu):
    """One (query-tile i, ref-tile j) grid step.

    ref_ref: (dim, TILE_N) channel-first ref tile
    q_ref:   (TILE_M, dim) point-major query tile
    d_ref:   (TILE_M, k)   output distances (written only at the last j)
    i_ref:   (TILE_M, k)   output indices   (written only at the last j)
    db_ref:  (TILE_M, k)   VMEM scratch: running best squared distances
    ib_ref:  (TILE_M, k)   VMEM scratch: running best ref indices
    """
    j = pl.program_id(1)
    n_tiles = pl.num_programs(1)

    # Scratch accumulators are resident across the whole j (reduction) axis.
    @pl.when(j == 0)
    def _():
        db_ref[...] = jnp.full(db_ref.shape, jnp.inf, jnp.float32)
        ib_ref[...] = jnp.full(ib_ref.shape, _IDX_SENTINEL, jnp.int32)

    r = ref_ref[...].astype(jnp.float32)          # (dim, TN)
    q = q_ref[...].astype(jnp.float32)            # (TM, dim)
    dim, tn = r.shape
    tm = q.shape[0]

    # Local column ids for this tile — built once, reused everywhere.
    col = lax.broadcasted_iota(jnp.int32, (1, tn), 1)                 # (1, TN)

    # Padded ref columns exist only on the last N tile: rewrite their
    # coordinates to a huge constant so their distances are enormous but
    # finite.  This is a (dim, TN) select instead of a per-tile (TM, TN)
    # compare+select on the distance matrix.
    if mask_needed:
        is_last_tile = j == n_tiles - 1
        pad_col = jnp.logical_and(is_last_tile, col >= n_valid_last)  # (1, TN)
        r = jnp.where(pad_col, jnp.float32(_PAD_COORD), r)

    # ---- pairwise squared distances for this tile pair -------------------
    if use_mxu:
        # ||q||^2 + ||r||^2 - 2 q.r  (MXU path for large feature dims).
        # TODO(synk): a bf16 MXU pass + exact re-rank of the k winners would be
        # ~4-8x faster here but risks cancellation near ties; kept f32.
        dot = jnp.dot(q, r, preferred_element_type=jnp.float32)       # (TM, TN)
        sq_q = jnp.sum(q * q, axis=1, keepdims=True)                  # (TM, 1)
        sq_r = jnp.sum(r * r, axis=0, keepdims=True)                  # (1, TN)
        d2 = jnp.maximum(sq_q + sq_r - 2.0 * dot, 0.0)
    else:
        # Direct difference on the VPU: exact, no wasted MXU latency for a
        # 3/4-deep contraction, no catastrophic cancellation.
        d2 = jnp.zeros((tm, tn), jnp.float32)
        for dd in range(dim):
            diff = q[:, dd:dd + 1] - r[dd:dd + 1, :]                  # (TM, TN)
            d2 = d2 + diff * diff

    inf = jnp.float32(jnp.inf)
    big = jnp.int32(_IDX_BIG)

    # ---- Phase A: top-kg of this tile (full width, local iota only) ------
    # No (TM, TN) index array and no ragged TN+k concat: per round we only
    # stream d2 plus two fused compare/selects.
    kg = min(k, tile_n)
    tile_d = []
    tile_i = []
    # TODO(synk): for k >= 16 a fori_loop + scratch formulation would bound
    # vreg live ranges; small-k point-cloud usage keeps this unrolled.
    for _ in range(kg):
        mv = jnp.min(d2, axis=1, keepdims=True)                       # (TM, 1)
        ml = jnp.min(jnp.where(d2 == mv, col, big), axis=1, keepdims=True)
        tile_d.append(mv)
        tile_i.append(ml)
        d2 = jnp.where(col == ml, inf, d2)        # invalidate only the winner

    cand_d = jnp.concatenate(tile_d, axis=1)                          # (TM, kg)
    cand_i = jnp.concatenate(tile_i, axis=1) + j * tile_n             # global ids

    # ---- Phase B: narrow merge (width kg + k) with the running best ------
    vals = jnp.concatenate([cand_d, db_ref[...]], axis=1)             # (TM, kg+k)
    idxs = jnp.concatenate([cand_i, ib_ref[...]], axis=1)
    best_d = []
    best_i = []
    for _ in range(k):
        mv = jnp.min(vals, axis=1, keepdims=True)
        mi = jnp.min(jnp.where(vals == mv, idxs, big), axis=1, keepdims=True)
        best_d.append(mv)
        best_i.append(mi)
        vals = jnp.where(idxs == mi, inf, vals)

    db_ref[...] = jnp.concatenate(best_d, axis=1)
    ib_ref[...] = jnp.concatenate(best_i, axis=1)

    # ---- finalize: single output store per query tile ---------------------
    @pl.when(j == n_tiles - 1)
    def _():
        d_ref[...] = jnp.sqrt(db_ref[...])
        i_ref[...] = ib_ref[...]


@functools.partial(jax.jit,
                   static_argnames=("k", "transpose_mode", "tile_m", "tile_n"))
def knn_pallas(ref, query, k, transpose_mode=False, tile_m=256, tile_n=1024):
    ref = jnp.asarray(ref, jnp.float32)
    query = jnp.asarray(query, jnp.float32)

    if transpose_mode:
        # Inputs are (N, dim) / (M, dim).  The kernel wants ref channel-first;
        # this transpose mirrors the .contiguous() copy the CUDA path makes.
        ref_cf = ref.T            # (dim, N)
        q_pm = query              # (M, dim) -- native, no copy
    else:
        # Inputs are channel-first already: the big ref array needs no copy.
        ref_cf = ref              # (dim, N)
        q_pm = query.T            # (M, dim) -- small copy (dim * M)

    dim, n = ref_cf.shape
    m, dim_q = q_pm.shape
    if dim != dim_q:
        raise ValueError(f"feature dims differ: {dim} vs {dim_q}")
    if not (1 <= k <= n):
        raise ValueError(f"need 1 <= k <= N_ref, got k={k}, N_ref={n}")

    # ---- tile selection ---------------------------------------------------
    tile_n = min(tile_n, _round_up(n, 128))
    tm = min(tile_m, _round_up(m, 8))
    # v7x has 2 TensorCores splitting the "parallel" query axis: make sure
    # there are at least 2 query tiles whenever M is large enough to matter.
    if m > 64 and _round_up(m, tm) // tm < 2:
        tm = _round_up((m + 1) // 2, 8)
    tile_m = tm

    m_pad = _round_up(m, tile_m)
    n_pad = _round_up(n, tile_n)
    if n_pad != n:
        ref_cf = jnp.pad(ref_cf, ((0, 0), (0, n_pad - n)))
    if m_pad != m:
        q_pm = jnp.pad(q_pm, ((0, m_pad - m), (0, 0)))

    n_tiles = n_pad // tile_n
    n_valid_last = n - (n_tiles - 1) * tile_n     # valid columns in the last tile
    mask_needed = (n_pad != n)
    use_mxu = dim >= _MXU_DIM_THRESHOLD
    grid = (m_pad // tile_m, n_tiles)

    kernel = functools.partial(
        _knn_kernel, k=k, tile_n=tile_n, n_valid_last=n_valid_last,
        mask_needed=mask_needed, use_mxu=use_mxu)

    cost = pl.CostEstimate(
        flops=int(3 * m * n * dim + 5 * k * m * n),
        transcendentals=int(m * k),
        bytes_accessed=int(4 * (dim * n * (m_pad // tile_m) + dim * m + 2 * m * k)),
    )

    d_mk, i_mk = pl.pallas_call(
        kernel,
        out_shape=(
            jax.ShapeDtypeStruct((m_pad, k), jnp.float32),
            jax.ShapeDtypeStruct((m_pad, k), jnp.int32),
        ),
        grid=grid,
        in_specs=[
            pl.BlockSpec((dim, tile_n), lambda i, j: (0, j)),   # ref tile
            pl.BlockSpec((tile_m, dim), lambda i, j: (i, 0)),   # query tile
        ],
        out_specs=(
            pl.BlockSpec((tile_m, k), lambda i, j: (i, 0)),     # written at last j
            pl.BlockSpec((tile_m, k), lambda i, j: (i, 0)),
        ),
        scratch_shapes=[
            pltpu.VMEM((tile_m, k), jnp.float32),               # running best d^2
            pltpu.VMEM((tile_m, k), jnp.int32),                 # running best idx
        ],
        compiler_params=pltpu.CompilerParams(
            dimension_semantics=("parallel", "arbitrary"),
            vmem_limit_bytes=32 * 1024 * 1024,
        ),
        cost_estimate=cost,
    )(ref_cf, q_pm)

    d_mk = d_mk[:m]
    i_mk = i_mk[:m]

    if transpose_mode:
        return d_mk, i_mk            # (M, k)
    return d_mk.T, i_mk.T            # (k, M)


class KNN:
    """JAX/Pallas equivalent of knn_cuda.KNN (no parameters)."""
    # TODO(synk): indices returned as int32 (CUDA extension returns int64).

    def __init__(self, k, transpose_mode=False):
        self.k = k
        self._t = transpose_mode

    def __call__(self, ref, query):
        return knn_pallas(ref, query, k=self.k, transpose_mode=self._t)


if __name__ == "__main__":
    key = jax.random.PRNGKey(0)
    k1, k2, k3, k4, k5, k6 = jax.random.split(key, 6)

    # ---------- small shapes, exact check against pure-JAX top-k ----------
    dim, n_ref, m_query, K = 4, 16, 8, 3
    ref = jax.random.normal(k1, (dim, n_ref), jnp.float32)      # (dim, N)
    query = jax.random.normal(k2, (dim, m_query), jnp.float32)  # (dim, M)

    d, i = KNN(k=K, transpose_mode=False)(ref, query)
    jax.block_until_ready((d, i))
    assert d.shape == (K, m_query) and i.shape == (K, m_query)

    diff = query[:, :, None] - ref[:, None, :]                  # (dim, M, N)
    dist = jnp.sqrt(jnp.sum(diff * diff, axis=0))               # (M, N)
    neg_top, idx = lax.top_k(-dist, K)
    assert jnp.allclose(d, (-neg_top).T, atol=1e-4)
    assert jnp.array_equal(i, idx.T.astype(jnp.int32))

    # transpose_mode=True path (row-major point clouds).
    d_t, i_t = KNN(k=K, transpose_mode=True)(ref.T, query.T)
    jax.block_until_ready((d_t, i_t))
    assert d_t.shape == (m_query, K) and i_t.shape == (m_query, K)
    assert jnp.allclose(d_t, d.T, atol=1e-4)
    assert jnp.array_equal(i_t, i.T)

    # ---------- multi-tile path: exercises the running top-k merge --------
    dim2, n2, m2, K2 = 3, 2000, 300, 8          # grid (2, 2) with padding
    ref2 = jax.random.normal(k3, (dim2, n2), jnp.float32)
    query2 = jax.random.normal(k4, (dim2, m2), jnp.float32)
    d2_, i2_ = KNN(k=K2, transpose_mode=False)(ref2, query2)
    jax.block_until_ready((d2_, i2_))

    diff2 = query2[:, :, None] - ref2[:, None, :]
    dist2 = jnp.sqrt(jnp.sum(diff2 * diff2, axis=0))            # (M, N)
    nt2, _ = lax.top_k(-dist2, K2)
    assert jnp.all((i2_ >= 0) & (i2_ < n2))
    # distance values match the true k smallest, in ascending order
    assert jnp.allclose(d2_.T, -nt2, atol=1e-4)
    # returned indices actually realise those distances, and are unique per query
    gath = jnp.take_along_axis(dist2, i2_.T, axis=1)
    assert jnp.allclose(d2_.T, gath, atol=1e-4)
    si = jnp.sort(i2_.T, axis=1)
    assert jnp.all(si[:, 1:] != si[:, :-1])
    assert jnp.all(d2_[1:] >= d2_[:-1])

    # ---------- large feature dim: exercises the MXU expansion path -------
    dim3, n3, m3, K3 = 64, 512, 128, 4
    ref3 = jax.random.normal(k5, (dim3, n3), jnp.float32)
    query3 = jax.random.normal(k6, (dim3, m3), jnp.float32)
    d3_, i3_ = KNN(k=K3, transpose_mode=False)(ref3, query3)
    jax.block_until_ready((d3_, i3_))

    diff3 = query3[:, :, None] - ref3[:, None, :]
    dist3 = jnp.sqrt(jnp.sum(diff3 * diff3, axis=0))
    nt3, _ = lax.top_k(-dist3, K3)
    assert jnp.allclose(d3_.T, -nt3, atol=1e-3)
    gath3 = jnp.take_along_axis(dist3, i3_.T, axis=1)
    assert jnp.allclose(d3_.T, gath3, atol=1e-3)

    print("KERNEL_OK")
</pallas_src>

<mosaic_0001>
module attributes {stable_mosaic.version = 11 : i64} {
  func.func @_knn_kernel(%arg0: i32, %arg1: i32, %arg2: memref<4x128xf32, #tpu.memory_space<vmem>>, %arg3: memref<8x4xf32, #tpu.memory_space<vmem>>, %arg4: memref<8x3xf32, #tpu.memory_space<vmem>>, %arg5: memref<8x3xi32, #tpu.memory_space<vmem>>, %arg6: memref<8x3xf32, #tpu.memory_space<vmem>>, %arg7: memref<8x3xi32, #tpu.memory_space<vmem>>) attributes {dimension_semantics = [#tpu.dimension_semantics<parallel>, #tpu.dimension_semantics<arbitrary>], iteration_bounds = array<i64: 1, 1>, scalar_prefetch = 0 : i64, scratch_operands = 2 : i64, tpu.core_type = #tpu.core_type<tc>, window_params = [{transform_indices = @transform_0, window_bounds = array<i64: 4, 128>}, {transform_indices = @transform_1, window_bounds = array<i64: 8, 4>}, {transform_indices = @transform_2, window_bounds = array<i64: 8, 3>}, {transform_indices = @transform_3, window_bounds = array<i64: 8, 3>}]} {
    %c0_i32 = arith.constant 0 : i32
    %0 = arith.cmpi eq, %arg1, %c0_i32 : i32
    %1 = arith.extui %0 : i1 to i32
    %c0_i32_0 = arith.constant 0 : i32
    %2 = arith.cmpi ne, %1, %c0_i32_0 : i32
    scf.if %2 {
      %cst_37 = arith.constant 0x7F800000 : f32
      %132 = vector.broadcast %cst_37 : f32 to vector<8x3xf32>
      %c0_38 = arith.constant 0 : index
      %c0_39 = arith.constant 0 : index
      %133 = vector.load %arg6[%c0_38, %c0_39] : memref<8x3xf32, #tpu.memory_space<vmem>>, vector<8x3xf32>
      tpu.vector_store %arg6[%c0_38, %c0_39], %132 {strides = array<i32>} : memref<8x3xf32, #tpu.memory_space<vmem>>, vector<8x3xf32>,
      %c2147483632_i32 = arith.constant 2147483632 : i32
      %134 = vector.broadcast %c2147483632_i32 : i32 to vector<8x3xi32>
      %c0_40 = arith.constant 0 : index
      %c0_41 = arith.constant 0 : index
      %135 = vector.load %arg7[%c0_40, %c0_41] : memref<8x3xi32, #tpu.memory_space<vmem>>, vector<8x3xi32>
      tpu.vector_store %arg7[%c0_40, %c0_41], %134 {strides = array<i32>} : memref<8x3xi32, #tpu.memory_space<vmem>>, vector<8x3xi32>,
    } else {
    }
    %c0 = arith.constant 0 : index
    %c0_1 = arith.constant 0 : index
    %3 = vector.load %arg2[%c0, %c0_1] : memref<4x128xf32, #tpu.memory_space<vmem>>, vector<4x128xf32>
    %c0_2 = arith.constant 0 : index
    %c0_3 = arith.constant 0 : index
    %4 = vector.load %arg3[%c0_2, %c0_3] : memref<8x4xf32, #tpu.memory_space<vmem>>, vector<8x4xf32>
    %5 = tpu.iota {dimensions = array<i32: 1>} : vector<1x128xi32>
    %c0_i32_4 = arith.constant 0 : i32
    %6 = arith.cmpi eq, %arg1, %c0_i32_4 : i32
    %c16_i32 = arith.constant 16 : i32
    %7 = vector.broadcast %c16_i32 : i32 to vector<1x128xi32>
    %8 = arith.cmpi sge, %5, %7 : vector<1x128xi32>
    %9 = vector.broadcast %6 : i1 to vector<1x128xi1>
    %10 = arith.andi %9, %8 : vector<1x128xi1>
    %cst = arith.constant 3.000000e+14 : f32
    %11 = vector.shape_cast %10 : vector<1x128xi1> to vector<1x128xi1>
    %12 = vector.broadcast %11 : vector<1x128xi1> to vector<4x128xi1>
    %13 = vector.broadcast %cst : f32 to vector<4x128xf32>
    %14 = arith.select %12, %13, %3 : vector<4x128xi1>, vector<4x128xf32>
    %cst_5 = arith.constant 0.000000e+00 : f32
    %15 = vector.broadcast %cst_5 : f32 to vector<8x128xf32>
    %16 = vector.extract_strided_slice %4 {offsets = [0, 0], sizes = [8, 1], strides = [1, 1]} : vector<8x4xf32> to vector<8x1xf32>
    %17 = vector.extract_strided_slice %14 {offsets = [0, 0], sizes = [1, 128], strides = [1, 1]} : vector<4x128xf32> to vector<1x128xf32>
    %18 = vector.broadcast %16 : vector<8x1xf32> to vector<8x128xf32>
    %19 = vector.broadcast %17 : vector<1x128xf32> to vector<8x128xf32>
    %20 = arith.subf %18, %19 : vector<8x128xf32>
    %21 = arith.mulf %20, %20 : vector<8x128xf32>
    %22 = arith.addf %15, %21 : vector<8x128xf32>
    %23 = vector.extract_strided_slice %4 {offsets = [0, 1], sizes = [8, 1], strides = [1, 1]} : vector<8x4xf32> to vector<8x1xf32>
    %24 = vector.extract_strided_slice %14 {offsets = [1, 0], sizes = [1, 128], strides = [1, 1]} : vector<4x128xf32> to vector<1x128xf32>
    %25 = vector.broadcast %23 : vector<8x1xf32> to vector<8x128xf32>
    %26 = vector.broadcast %24 : vector<1x128xf32> to vector<8x128xf32>
    %27 = arith.subf %25, %26 : vector<8x128xf32>
    %28 = arith.mulf %27, %27 : vector<8x128xf32>
    %29 = arith.addf %22, %28 : vector<8x128xf32>
    %30 = vector.extract_strided_slice %4 {offsets = [0, 2], sizes = [8, 1], strides = [1, 1]} : vector<8x4xf32> to vector<8x1xf32>
    %31 = vector.extract_strided_slice %14 {offsets = [2, 0], sizes = [1, 128], strides = [1, 1]} : vector<4x128xf32> to vector<1x128xf32>
    %32 = vector.broadcast %30 : vector<8x1xf32> to vector<8x128xf32>
    %33 = vector.broadcast %31 : vector<1x128xf32> to vector<8x128xf32>
    %34 = arith.subf %32, %33 : vector<8x128xf32>
    %35 = arith.mulf %34, %34 : vector<8x128xf32>
    %36 = arith.addf %29, %35 : vector<8x128xf32>
    %37 = vector.extract_strided_slice %4 {offsets = [0, 3], sizes = [8, 1], strides = [1, 1]} : vector<8x4xf32> to vector<8x1xf32>
    %38 = vector.extract_strided_slice %14 {offsets = [3, 0], sizes = [1, 128], strides = [1, 1]} : vector<4x128xf32> to vector<1x128xf32>
    %39 = vector.broadcast %37 : vector<8x1xf32> to vector<8x128xf32>
    %40 = vector.broadcast %38 : vector<1x128xf32> to vector<8x128xf32>
    %41 = arith.subf %39, %40 : vector<8x128xf32>
    %42 = arith.mulf %41, %41 : vector<8x128xf32>
    %43 = arith.addf %36, %42 : vector<8x128xf32>
    %cst_6 = arith.constant dense<0x7F800000> : vector<8xf32>
    %44 = vector.multi_reduction <minimumf>, %43, %cst_6 [1] : vector<8x128xf32> to vector<8xf32>
    %45 = vector.shape_cast %44 : vector<8xf32> to vector<8x1xf32>
    %46 = vector.broadcast %45 : vector<8x1xf32> to vector<8x128xf32>
    %47 = arith.cmpf oeq, %43, %46 : vector<8x128xf32>
    %c2147483647_i32 = arith.constant 2147483647 : i32
    %48 = vector.shape_cast %5 : vector<1x128xi32> to vector<1x128xi32>
    %49 = vector.broadcast %48 : vector<1x128xi32> to vector<8x128xi32>
    %50 = vector.broadcast %c2147483647_i32 : i32 to vector<8x128xi32>
    %51 = arith.select %47, %49, %50 : vector<8x128xi1>, vector<8x128xi32>
    %cst_7 = arith.constant dense<2147483647> : vector<8xi32>
    %52 = vector.multi_reduction <minsi>, %51, %cst_7 [1] : vector<8x128xi32> to vector<8xi32>
    %53 = vector.shape_cast %52 : vector<8xi32> to vector<8x1xi32>
    %54 = vector.broadcast %5 : vector<1x128xi32> to vector<8x128xi32>
    %55 = vector.broadcast %53 : vector<8x1xi32> to vector<8x128xi32>
    %56 = arith.cmpi eq, %54, %55 : vector<8x128xi32>
    %cst_8 = arith.constant 0x7F800000 : f32
    %57 = vector.broadcast %cst_8 : f32 to vector<8x128xf32>
    %58 = arith.select %56, %57, %43 : vector<8x128xi1>, vector<8x128xf32>
    %cst_9 = arith.constant dense<0x7F800000> : vector<8xf32>
    %59 = vector.multi_reduction <minimumf>, %58, %cst_9 [1] : vector<8x128xf32> to vector<8xf32>
    %60 = vector.shape_cast %59 : vector<8xf32> to vector<8x1xf32>
    %61 = vector.broadcast %60 : vector<8x1xf32> to vector<8x128xf32>
    %62 = arith.cmpf oeq, %58, %61 : vector<8x128xf32>
    %c2147483647_i32_10 = arith.constant 2147483647 : i32
    %63 = vector.shape_cast %5 : vector<1x128xi32> to vector<1x128xi32>
    %64 = vector.broadcast %63 : vector<1x128xi32> to vector<8x128xi32>
    %65 = vector.broadcast %c2147483647_i32_10 : i32 to vector<8x128xi32>
    %66 = arith.select %62, %64, %65 : vector<8x128xi1>, vector<8x128xi32>
    %cst_11 = arith.constant dense<2147483647> : vector<8xi32>
    %67 = vector.multi_reduction <minsi>, %66, %cst_11 [1] : vector<8x128xi32> to vector<8xi32>
    %68 = vector.shape_cast %67 : vector<8xi32> to vector<8x1xi32>
    %69 = vector.broadcast %5 : vector<1x128xi32> to vector<8x128xi32>
    %70 = vector.broadcast %68 : vector<8x1xi32> to vector<8x128xi32>
    %71 = arith.cmpi eq, %69, %70 : vector<8x128xi32>
    %cst_12 = arith.constant 0x7F800000 : f32
    %72 = vector.broadcast %cst_12 : f32 to vector<8x128xf32>
    %73 = arith.select %71, %72, %58 : vector<8x128xi1>, vector<8x128xf32>
    %cst_13 = arith.constant dense<0x7F800000> : vector<8xf32>
    %74 = vector.multi_reduction <minimumf>, %73, %cst_13 [1] : vector<8x128xf32> to vector<8xf32>
    %75 = vector.shape_cast %74 : vector<8xf32> to vector<8x1xf32>
    %76 = vector.broadcast %75 : vector<8x1xf32> to vector<8x128xf32>
    %77 = arith.cmpf oeq, %73, %76 : vector<8x128xf32>
    %c2147483647_i32_14 = arith.constant 2147483647 : i32
    %78 = vector.shape_cast %5 : vector<1x128xi32> to vector<1x128xi32>
    %79 = vector.broadcast %78 : vector<1x128xi32> to vector<8x128xi32>
    %80 = vector.broadcast %c2147483647_i32_14 : i32 to vector<8x128xi32>
    %81 = arith.select %77, %79, %80 : vector<8x128xi1>, vector<8x128xi32>
    %cst_15 = arith.constant dense<2147483647> : vector<8xi32>
    %82 = vector.multi_reduction <minsi>, %81, %cst_15 [1] : vector<8x128xi32> to vector<8xi32>
    %83 = vector.shape_cast %82 : vector<8xi32> to vector<8x1xi32>
    %84 = tpu.concatenate %45, %60, %75 in 1 : vector<8x1xf32>, vector<8x1xf32>, vector<8x1xf32> -> vector<8x3xf32>
    %85 = tpu.concatenate %53, %68, %83 in 1 : vector<8x1xi32>, vector<8x1xi32>, vector<8x1xi32> -> vector<8x3xi32>
    %c128_i32 = arith.constant 128 : i32
    %86 = arith.muli %arg1, %c128_i32 : i32
    %87 = vector.broadcast %86 : i32 to vector<8x3xi32>
    %88 = arith.addi %85, %87 : vector<8x3xi32>
    %c0_16 = arith.constant 0 : index
    %c0_17 = arith.constant 0 : index
    %89 = vector.load %arg6[%c0_16, %c0_17] : memref<8x3xf32, #tpu.memory_space<vmem>>, vector<8x3xf32>
    %90 = tpu.concatenate %84, %89 in 1 : vector<8x3xf32>, vector<8x3xf32> -> vector<8x6xf32>
    %c0_18 = arith.constant 0 : index
    %c0_19 = arith.constant 0 : index
    %91 = vector.load %arg7[%c0_18, %c0_19] : memref<8x3xi32, #tpu.memory_space<vmem>>, vector<8x3xi32>
    %92 = tpu.concatenate %88, %91 in 1 : vector<8x3xi32>, vector<8x3xi32> -> vector<8x6xi32>
    %cst_20 = arith.constant dense<0x7F800000> : vector<8xf32>
    %93 = vector.multi_reduction <minimumf>, %90, %cst_20 [1] : vector<8x6xf32> to vector<8xf32>
    %94 = vector.shape_cast %93 : vector<8xf32> to vector<8x1xf32>
    %95 = vector.broadcast %94 : vector<8x1xf32> to vector<8x6xf32>
    %96 = arith.cmpf oeq, %90, %95 : vector<8x6xf32>
    %c2147483647_i32_21 = arith.constant 2147483647 : i32
    %97 = vector.broadcast %c2147483647_i32_21 : i32 to vector<8x6xi32>
    %98 = arith.select %96, %92, %97 : vector<8x6xi1>, vector<8x6xi32>
    %cst_22 = arith.constant dense<2147483647> : vector<8xi32>
    %99 = vector.multi_reduction <minsi>, %98, %cst_22 [1] : vector<8x6xi32> to vector<8xi32>
    %100 = vector.shape_cast %99 : vector<8xi32> to vector<8x1xi32>
    %101 = vector.broadcast %100 : vector<8x1xi32> to vector<8x6xi32>
    %102 = arith.cmpi eq, %92, %101 : vector<8x6xi32>
    %cst_23 = arith.constant 0x7F800000 : f32
    %103 = vector.broadcast %cst_23 : f32 to vector<8x6xf32>
    %104 = arith.select %102, %103, %90 : vector<8x6xi1>, vector<8x6xf32>
    %cst_24 = arith.constant dense<0x7F800000> : vector<8xf32>
    %105 = vector.multi_reduction <minimumf>, %104, %cst_24 [1] : vector<8x6xf32> to vector<8xf32>
    %106 = vector.shape_cast %105 : vector<8xf32> to vector<8x1xf32>
    %107 = vector.broadcast %106 : vector<8x1xf32> to vector<8x6xf32>
    %108 = arith.cmpf oeq, %104, %107 : vector<8x6xf32>
    %c2147483647_i32_25 = arith.constant 2147483647 : i32
    %109 = vector.broadcast %c2147483647_i32_25 : i32 to vector<8x6xi32>
    %110 = arith.select %108, %92, %109 : vector<8x6xi1>, vector<8x6xi32>
    %cst_26 = arith.constant dense<2147483647> : vector<8xi32>
    %111 = vector.multi_reduction <minsi>, %110, %cst_26 [1] : vector<8x6xi32> to vector<8xi32>
    %112 = vector.shape_cast %111 : vector<8xi32> to vector<8x1xi32>
    %113 = vector.broadcast %112 : vector<8x1xi32> to vector<8x6xi32>
    %114 = arith.cmpi eq, %92, %113 : vector<8x6xi32>
    %cst_27 = arith.constant 0x7F800000 : f32
    %115 = vector.broadcast %cst_27 : f32 to vector<8x6xf32>
    %116 = arith.select %114, %115, %104 : vector<8x6xi1>, vector<8x6xf32>
    %cst_28 = arith.constant dense<0x7F800000> : vector<8xf32>
    %117 = vector.multi_reduction <minimumf>, %116, %cst_28 [1] : vector<8x6xf32> to vector<8xf32>
    %118 = vector.shape_cast %117 : vector<8xf32> to vector<8x1xf32>
    %119 = vector.broadcast %118 : vector<8x1xf32> to vector<8x6xf32>
    %120 = arith.cmpf oeq, %116, %119 : vector<8x6xf32>
    %c2147483647_i32_29 = arith.constant 2147483647 : i32
    %121 = vector.broadcast %c2147483647_i32_29 : i32 to vector<8x6xi32>
    %122 = arith.select %120, %92, %121 : vector<8x6xi1>, vector<8x6xi32>
    %cst_30 = arith.constant dense<2147483647> : vector<8xi32>
    %123 = vector.multi_reduction <minsi>, %122, %cst_30 [1] : vector<8x6xi32> to vector<8xi32>
    %124 = vector.shape_cast %123 : vector<8xi32> to vector<8x1xi32>
    %125 = tpu.concatenate %94, %106, %118 in 1 : vector<8x1xf32>, vector<8x1xf32>, vector<8x1xf32> -> vector<8x3xf32>
    %c0_31 = arith.constant 0 : index
    %c0_32 = arith.constant 0 : index
    %126 = vector.load %arg6[%c0_31, %c0_32] : memref<8x3xf32, #tpu.memory_space<vmem>>, vector<8x3xf32>
    tpu.vector_store %arg6[%c0_31, %c0_32], %125 {strides = array<i32>} : memref<8x3xf32, #tpu.memory_space<vmem>>, vector<8x3xf32>,
    %127 = tpu.concatenate %100, %112, %124 in 1 : vector<8x1xi32>, vector<8x1xi32>, vector<8x1xi32> -> vector<8x3xi32>
    %c0_33 = arith.constant 0 : index
    %c0_34 = arith.constant 0 : index
    %128 = vector.load %arg7[%c0_33, %c0_34] : memref<8x3xi32, #tpu.memory_space<vmem>>, vector<8x3xi32>
    tpu.vector_store %arg7[%c0_33, %c0_34], %127 {strides = array<i32>} : memref<8x3xi32, #tpu.memory_space<vmem>>, vector<8x3xi32>,
    %c0_i32_35 = arith.constant 0 : i32
    %129 = arith.cmpi eq, %arg1, %c0_i32_35 : i32
    %130 = arith.extui %129 : i1 to i32
    %c0_i32_36 = arith.constant 0 : i32
    %131 = arith.cmpi ne, %130, %c0_i32_36 : i32
    scf.if %131 {
      %c0_37 = arith.constant 0 : index
      %c0_38 = arith.constant 0 : index
      %132 = vector.load %arg6[%c0_37, %c0_38] : memref<8x3xf32, #tpu.memory_space<vmem>>, vector<8x3xf32>
      %133 = math.sqrt %132 : vector<8x3xf32>
      %c0_39 = arith.constant 0 : index
      %c0_40 = arith.constant 0 : index
      %134 = vector.load %arg4[%c0_39, %c0_40] : memref<8x3xf32, #tpu.memory_space<vmem>>, vector<8x3xf32>
      tpu.vector_store %arg4[%c0_39, %c0_40], %133 {strides = array<i32>} : memref<8x3xf32, #tpu.memory_space<vmem>>, vector<8x3xf32>,
      %c0_41 = arith.constant 0 : index
      %c0_42 = arith.constant 0 : index
      %135 = vector.load %arg7[%c0_41, %c0_42] : memref<8x3xi32, #tpu.memory_space<vmem>>, vector<8x3xi32>
      %c0_43 = arith.constant 0 : index
      %c0_44 = arith.constant 0 : index
      %136 = vector.load %arg5[%c0_43, %c0_44] : memref<8x3xi32, #tpu.memory_space<vmem>>, vector<8x3xi32>
      tpu.vector_store %arg5[%c0_43, %c0_44], %135 {strides = array<i32>} : memref<8x3xi32, #tpu.memory_space<vmem>>, vector<8x3xi32>,
    } else {
    }
    return
  }
  func.func @transform_0(%arg0: i32, %arg1: i32) -> (i32, i32) {
    %c0_i32 = arith.constant 0 : i32
    %c0_i32_0 = arith.constant 0 : i32
    return %c0_i32, %arg1 : i32, i32
  }
  func.func @transform_1(%arg0: i32, %arg1: i32) -> (i32, i32) {
    %c0_i32 = arith.constant 0 : i32
    %c0_i32_0 = arith.constant 0 : i32
    return %arg0, %c0_i32 : i32, i32
  }
  func.func @transform_2(%arg0: i32, %arg1: i32) -> (i32, i32) {
    %c0_i32 = arith.constant 0 : i32
    %c0_i32_0 = arith.constant 0 : i32
    return %arg0, %c0_i32 : i32, i32
  }
  func.func @transform_3(%arg0: i32, %arg1: i32) -> (i32, i32) {
    %c0_i32 = arith.constant 0 : i32
    %c0_i32_0 = arith.constant 0 : i32
    return %arg0, %c0_i32 : i32, i32
  }
}

</mosaic_0001>

<bundles_post_ra>
// kernel: knn_pallas.1
= control target key start
LH: loop header
LB: loop body
LE: loop exit
PB: predicated region body
PF: predicated region fallthrough
CT: control target
= control target key end

     0   :  { %v262_v0 = vmov 0   ;;  %v263_v2 = vmov 2   ;;  %v264_v3 = vmov 1   ;;  %v265_v4 = vmov 3   ;;  %s331_s1 = inlined_call_operand.vmem [shape: f32[8,4], index: 1, kind: input, shape index: {}]   ;;  %s332_s0 = inlined_call_operand.vmem [shape: f32[4,128], index: 0, kind: input, shape index: {}]   ;;  %s333_s2 = inlined_call_operand.vmem [shape: f32[8,3], index: 2, kind: output, shape index: {0}]   ;;  %s334_s3 = inlined_call_operand.vmem [shape: s32[8,3], index: 3, kind: output, shape index: {1}]  }
   0x1   :  { %255 = vset.pattern.permute.xlu0 %v262_v0  ;;  %v21_v1 = vld [vmem:[%s331_s1] sm:$0xff]  ;;  %257 = vset.pattern.permute.xlu1 %v263_v2  ;;  %v22_v5 = vlaneseq  ;;  %vm17_vm6 = vcmask 23552   ;;  %v266_v55 = vmov inf   ;;  %vm135_vm9 = vcmask 7168  }
   0x2   :  { %34 = vperm.xlu0 %255, %v21_v1   ;;  %56 = vperm.xlu1 %257, %v21_v1   ;;  %v20_v8 = vld [vmem:[%s332_s0] sm:$0xf]  ;;  %18 = vst.msk [vmem:[#allocation2] sm:$0xff] %vm17_vm6, %v266_v55  ;;  %s267_s0 = smov 3   ;;  %vm137_vm10 = vcmask 15360   ;;  %vm155_vm11 = vcmask 48128  }
   0x3   :  { %v292_v6 = vand.u32 127, %v22_v5  ;;  %v38_v7 = vshrl.u32 %v22_v5, 7 }
   0x5   :  { %vm24_vm0 = vcmp.ge.s32.totalorder %v292_v6, 16  ;;  %v39_v9 = vsub.s32 0, %v38_v7  ;;  %v61_v11 = vsub.s32 2, %v38_v7  ;;  %v50_v12 = vsub.s32 1, %v38_v7 }
   0x6   :  { %256 = vset.pattern.permute.xlu0 %v264_v3  ;;  %258 = vset.pattern.permute.xlu1 %v265_v4  ;;  %v31_v10 = vsel %vm24_vm0, 3e+14, %v20_v8  ;;  %v72_v13 = vsub.s32 3, %v38_v7 }
   0x7   :  { %45 = vperm.xlu0 %256, %v21_v1   ;;  %67 = vperm.xlu1 %258, %v21_v1   ;;  %v40_v15 = vrot.slane %v31_v10, %v39_v9  ;;  %v62_v17 = vrot.slane %v31_v10, %v61_v11  ;;  %v51_v18 = vrot.slane %v31_v10, %v50_v12  ;;  %v268_v9 = vmov 2147483632  }
   0x8   :  { %v73_v19 = vrot.slane %v31_v10, %v72_v13  ;;  %19 = vst.msk [vmem:[#allocation3] sm:$0xff] %vm17_vm6, %v268_v9 }
   0x9   :  { %v144_v62 = vld [vmem:[#allocation2] sm:$0xff] }
   0xb   :  { %259 = vset.pattern.permute.xlu0 %v265_v4 }
   0xf   :  { %v151_v13 = vld [vmem:[#allocation3] sm:$0xff] }
  0x7d   :  { %v35_v14 = vpop.permute.xlu0 %34  ;;  %v57_v16 = vpop.permute.xlu1 %56 }
  0x7e   :  { %v41_v20 = vsub.f32 %v35_v14, %v40_v15  ;;  %v63_v23 = vsub.f32 %v57_v16, %v62_v17 }
  0x80   :  { %v42_v26 = vmul.f32 %v41_v20, %v41_v20  ;;  %v64_v28 = vmul.f32 %v63_v23, %v63_v23 }
  0x82   :  { %v46_v21 = vpop.permute.xlu0 %45  ;;  %v68_v22 = vpop.permute.xlu1 %67 }
  0x83   :  { %v52_v24 = vsub.f32 %v46_v21, %v51_v18  ;;  %v74_v25 = vsub.f32 %v68_v22, %v73_v19 }
  0x85   :  { %v53_v27 = vmul.f32 %v52_v24, %v52_v24  ;;  %v75_v30 = vmul.f32 %v74_v25, %v74_v25 }
  0x87   :  { %v54_v29 = vadd.f32 %v53_v27, %v42_v26 }
  0x89   :  { %v65_v31 = vadd.f32 %v64_v28, %v54_v29 }
  0x8b   :  { %v76_v32 = vadd.f32 %v75_v30, %v65_v31 }
  0x8d   :  { %77 = vmin.xlane.f32.xlu1 %v76_v32 }
 0x116   :  { %v78_v33 = vpop.xlane.xlu1 %77 }
 0x117   :  { %vm79_vm1 = vcmp.eq.f32.partialorder %v76_v32, %v78_v33 }
 0x118   :  { %v80_v34 = vsel %vm79_vm1, %v292_v6, 2147483647 }
 0x119   :  { %v82_v35 = vshra.s32 %v80_v34, 16  ;;  %v81_v37 = vand.u32 65535, %v80_v34 }
 0x11b   :  { %v84_v36 = vcvt.s32.f32 %v82_v35  ;;  %v83_v39 = vcvt.s32.f32 %v81_v37 }
 0x11d   :  { %85 = vmin.xlane.f32.xlu0 %v84_v36 }
 0x1a6   :  { %v86_v38 = vpop.xlane.xlu0 %85 }
 0x1a7   :  { %vm87_vm2 = vcmp.eq.f32.partialorder %v84_v36, %v86_v38  ;;  %v92_v41 = vcvt.f32.s32 %v86_v38 }
 0x1a8   :  { %v88_v40 = vsel %vm87_vm2, %v83_v39, inf }
 0x1a9   :  { %89 = vmin.xlane.f32.xlu0 %v88_v40  ;;  %v93_v43 = vshll.u32 %v92_v41, 16 }
 0x232   :  { %v90_v42 = vpop.xlane.xlu0 %89 }
 0x233   :  { %v91_v44 = vcvt.f32.s32 %v90_v42 }
 0x235   :  { %v94_v45 = vadd.s32 %v93_v43, %v91_v44 }
 0x237   :  { %vm95_vm3 = vcmp.eq.s32.totalorder %v292_v6, %v94_v45 }
 0x238   :  { %v96_v46 = vsel %vm95_vm3, inf, %v76_v32 }
 0x239   :  { %97 = vmin.xlane.f32.xlu1 %v96_v46 }
 0x2c2   :  { %v98_v47 = vpop.xlane.xlu1 %97 }
 0x2c3   :  { %vm99_vm4 = vcmp.eq.f32.partialorder %v96_v46, %v98_v47  ;;  %v136_v3 = vsel %vm135_vm9, %v78_v33, %v98_v47 }
 0x2c4   :  { %v100_v48 = vsel %vm99_vm4, %v292_v6, 2147483647 }
 0x2c5   :  { %v102_v49 = vshra.s32 %v100_v48, 16  ;;  %v101_v51 = vand.u32 65535, %v100_v48 }
 0x2c7   :  { %v104_v50 = vcvt.s32.f32 %v102_v49  ;;  %v103_v53 = vcvt.s32.f32 %v101_v51 }
 0x2c9   :  { %105 = vmin.xlane.f32.xlu0 %v104_v50 }
 0x352   :  { %v106_v52 = vpop.xlane.xlu0 %105 }
 0x353   :  { %vm107_vm5 = vcmp.eq.f32.partialorder %v104_v50, %v106_v52  ;;  %v112_v56 = vcvt.f32.s32 %v106_v52 }
 0x354   :  { %v108_v54 = vsel %vm107_vm5, %v103_v53, inf }
 0x355   :  { %109 = vmin.xlane.f32.xlu1 %v108_v54  ;;  %v113_v58 = vshll.u32 %v112_v56, 16 }
 0x3de   :  { %v110_v57 = vpop.xlane.xlu1 %109 }
 0x3df   :  { %v111_v59 = vcvt.f32.s32 %v110_v57 }
 0x3e1   :  { %v114_v60 = vadd.s32 %v113_v58, %v111_v59 }
 0x3e3   :  { %vm115_vm7 = vcmp.eq.s32.totalorder %v292_v6, %v114_v60  ;;  %v139_v20 = vsel %vm135_vm9, %v94_v45, %v114_v60 }
 0x3e4   :  { %v116_v61 = vsel %vm115_vm7, inf, %v96_v46 }
 0x3e5   :  { %117 = vmin.xlane.f32.xlu0 %v116_v61 }
 0x3fb   :  { %146 = vrot.lane.b32.xlu0 %v144_v62, %s267_s0 }
 0x46e   :  { %v118_v63 = vpop.xlane.xlu0 %117 }
 0x46f   :  { %vm119_vm8 = vcmp.eq.f32.partialorder %v116_v61, %v118_v63  ;;  %v138_v5 = vsel %vm137_vm10, %v136_v3, %v118_v63 }
 0x470   :  { %v120_v0 = vsel %vm119_vm8, %v292_v6, 2147483647 }
 0x471   :  { %v122_v1 = vshra.s32 %v120_v0, 16  ;;  %v121_v10 = vand.u32 65535, %v120_v0 }
 0x472   :  { %v147_v2 = vpop.permute.xlu0 %146 }
 0x473   :  { %v124_v4 = vcvt.s32.f32 %v122_v1  ;;  %v150_v7 = vsel %vm17_vm6, %v138_v5, %v147_v2  ;;  %v123_v11 = vcvt.s32.f32 %v121_v10 }
 0x474   :  { %v156_v8 = vsel %vm155_vm11, %v150_v7, inf }
 0x475   :  { %125 = vmin.xlane.f32.xlu1 %v124_v4 }
 0x479   :  { %157 = vmin.xlane.f32.xlu1 %v156_v8 }
 0x4fe   :  { %v126_v6 = vpop.xlane.xlu1 %125 }
 0x4ff   :  { %vm127_vm12 = vcmp.eq.f32.partialorder %v124_v4, %v126_v6  ;;  %v132_v15 = vcvt.f32.s32 %v126_v6 }
 0x500   :  { %v128_v12 = vsel %vm127_vm12, %v123_v11, inf }
 0x501   :  { %129 = vmin.xlane.f32.xlu1 %v128_v12  ;;  %v133_v17 = vshll.u32 %v132_v15, 16 }
 0x502   :  { %v158_v14 = vpop.xlane.xlu1 %157 }
 0x503   :  { %vm159_vm13 = vcmp.eq.f32.partialorder %v150_v7, %v158_v14 }
 0x512   :  { %152 = vrot.lane.b32.xlu1 %v151_v13, %s267_s0 }
 0x58a   :  { %v130_v16 = vpop.xlane.xlu1 %129 }
 0x58b   :  { %v131_v18 = vcvt.f32.s32 %v130_v16 }
 0x58d   :  { %v134_v19 = vadd.s32 %v133_v17, %v131_v18 }
 0x58e   :  { %v153_v21 = vpop.permute.xlu1 %152 }
 0x58f   :  { %v140_v22 = vsel %vm137_vm10, %v139_v20, %v134_v19 }
 0x590   :  { %v154_v23 = vsel %vm17_vm6, %v140_v22, %v153_v21 }
 0x591   :  { %v160_v24 = vsel %vm159_vm13, %v154_v23, 2147483647 }
 0x592   :  { %v161_v25 = vsel %vm155_vm11, %v160_v24, 2147483647 }
 0x593   :  { %v163_v26 = vshra.s32 %v161_v25, 16  ;;  %v162_v28 = vand.u32 65535, %v161_v25 }
 0x595   :  { %v165_v27 = vcvt.s32.f32 %v163_v26  ;;  %v164_v30 = vcvt.s32.f32 %v162_v28 }
 0x597   :  { %166 = vmin.xlane.f32.xlu0 %v165_v27 }
 0x620   :  { %v167_v29 = vpop.xlane.xlu0 %166 }
 0x621   :  { %vm168_vm14 = vcmp.eq.f32.partialorder %v165_v27, %v167_v29  ;;  %v173_v32 = vcvt.f32.s32 %v167_v29 }
 0x622   :  { %v169_v31 = vsel %vm168_vm14, %v164_v30, inf }
 0x623   :  { %170 = vmin.xlane.f32.xlu1 %v169_v31  ;;  %v174_v34 = vshll.u32 %v173_v32, 16 }
 0x6ac   :  { %v171_v33 = vpop.xlane.xlu1 %170 }
 0x6ad   :  { %v172_v35 = vcvt.f32.s32 %v171_v33 }
 0x6af   :  { %v175_v36 = vadd.s32 %v174_v34, %v172_v35 }
 0x6b1   :  { %vm176_vm15 = vcmp.eq.s32.totalorder %v154_v23, %v175_v36 }
 0x6b2   :  { %v177_v37 = vsel %vm176_vm15, inf, %v150_v7 }
 0x6b3   :  { %v178_v38 = vsel %vm155_vm11, %v177_v37, inf }
 0x6b4   :  { %179 = vmin.xlane.f32.xlu0 %v178_v38 }
 0x73d   :  { %v180_v39 = vpop.xlane.xlu0 %179 }
 0x73e   :  { %vm181_vm0 = vcmp.eq.f32.partialorder %v177_v37, %v180_v39  ;;  %v220_v55 = vsel %vm135_vm9, %v158_v14, %v180_v39 }
 0x73f   :  { %v182_v40 = vsel %vm181_vm0, %v154_v23, 2147483647 }
 0x740   :  { %v183_v41 = vsel %vm155_vm11, %v182_v40, 2147483647 }
 0x741   :  { %v185_v42 = vshra.s32 %v183_v41, 16  ;;  %v184_v44 = vand.u32 65535, %v183_v41 }
 0x743   :  { %v187_v43 = vcvt.s32.f32 %v185_v42  ;;  %v186_v46 = vcvt.s32.f32 %v184_v44 }
 0x745   :  { %188 = vmin.xlane.f32.xlu0 %v187_v43 }
 0x7ce   :  { %v189_v45 = vpop.xlane.xlu0 %188 }
 0x7cf   :  { %vm190_vm1 = vcmp.eq.f32.partialorder %v187_v43, %v189_v45  ;;  %v195_v48 = vcvt.f32.s32 %v189_v45 }
 0x7d0   :  { %v191_v47 = vsel %vm190_vm1, %v186_v46, inf }
 0x7d1   :  { %192 = vmin.xlane.f32.xlu0 %v191_v47  ;;  %v196_v50 = vshll.u32 %v195_v48, 16 }
 0x85a   :  { %v193_v49 = vpop.xlane.xlu0 %192 }
 0x85b   :  { %v194_v51 = vcvt.f32.s32 %v193_v49 }
 0x85d   :  { %v197_v52 = vadd.s32 %v196_v50, %v194_v51 }
 0x85f   :  { %vm198_vm2 = vcmp.eq.s32.totalorder %v154_v23, %v197_v52  ;;  %v223_v13 = vsel %vm135_vm9, %v175_v36, %v197_v52 }
 0x860   :  { %v199_v53 = vsel %vm198_vm2, inf, %v177_v37 }
 0x861   :  { %v200_v54 = vsel %vm155_vm11, %v199_v53, inf }
 0x862   :  { %201 = vmin.xlane.f32.xlu1 %v200_v54 }
 0x8eb   :  { %v202_v56 = vpop.xlane.xlu1 %201 }
 0x8ec   :  { %vm203_vm3 = vcmp.eq.f32.partialorder %v199_v53, %v202_v56  ;;  %v221_v57 = vsel %vm137_vm10, %v220_v55, %v202_v56 }
 0x8ed   :  { %v204_v58 = vsel %vm203_vm3, %v154_v23, 2147483647  ;;  %222 = vst.msk [vmem:[#allocation2] sm:$0xff] %vm17_vm6, %v221_v57 }
 0x8ee   :  { %v205_v59 = vsel %vm155_vm11, %v204_v58, 2147483647 }
 0x8ef   :  { %v207_v60 = vshra.s32 %v205_v59, 16  ;;  %v206_v4 = vand.u32 65535, %v205_v59 }
 0x8f1   :  { %v209_v61 = vcvt.s32.f32 %v207_v60  ;;  %v208_v7 = vcvt.s32.f32 %v206_v4 }
 0x8f3   :  { %210 = vmin.xlane.f32.xlu0 %v209_v61 }
 0x8f4   :  { %v229_v62 = vld [vmem:[#allocation2] sm:$0xff] }
 0x8f5   :  { %260 = vrsqrt.f32 %v229_v62  ;;  %vm232_vm4 = vcmp.eq.f32.partialorder %v229_v62, inf  ;;  %v235_v1 = vand.u32 2147483648, %v229_v62  ;;  %vm234_vm5 = vcmp.eq.f32.partialorder %v229_v62, 0.0 }
 0x902   :  { %v261_v63 = vpop.eup %260 }
 0x903   :  { %v231_v0 = vmul.f32 %v261_v63, %v229_v62 }
 0x905   :  { %v233_v2 = vsel %vm232_vm4, %v229_v62, %v231_v0 }
 0x906   :  { %v236_v3 = vsel %vm234_vm5, %v235_v1, %v233_v2 }
 0x907   :  { %237 = vst.msk [vmem:[%s333_s2] sm:$0xff] %vm17_vm6, %v236_v3 }
 0x97c   :  { %v211_v5 = vpop.xlane.xlu0 %210 }
 0x97d   :  { %vm212_vm7 = vcmp.eq.f32.partialorder %v209_v61, %v211_v5  ;;  %v217_v9 = vcvt.f32.s32 %v211_v5 }
 0x97e   :  { %v213_v8 = vsel %vm212_vm7, %v208_v7, inf }
 0x97f   :  { %214 = vmin.xlane.f32.xlu1 %v213_v8  ;;  %v218_v6 = vshll.u32 %v217_v9, 16 }
 0xa08   :  { %v215_v10 = vpop.xlane.xlu1 %214 }
 0xa09   :  { %v216_v11 = vcvt.f32.s32 %v215_v10 }
 0xa0b   :  { %v219_v12 = vadd.s32 %v218_v6, %v216_v11 }
 0xa0d   :  { %v224_v14 = vsel %vm137_vm10, %v223_v13, %v219_v12 }
 0xa0e   :  { %225 = vst.msk [vmem:[#allocation3] sm:$0xff] %vm17_vm6, %v224_v14 }
 0xa15   :  { %v238_v15 = vld [vmem:[#allocation3] sm:$0xff] }
 0xa16   :  { %239 = vst.msk [vmem:[%s334_s3] sm:$0xff] %vm17_vm6, %v238_v15 }

</bundles_post_ra>
